<compile_context>
chip_gen: v5e
topology: v5e:2x2
jax: 0.10.0
libtpu: 0.0.40
codegen_flags: <defaults>
</compile_context>

<pallas_src>
import functools

import jax
import jax.numpy as jnp
from jax.experimental import pallas as pl
from jax.experimental.pallas import tpu as pltpu


_NEG_PAD = -1e30  # finite large-negative pad (avoids 0 * inf = nan on the MXU)


def _round_up(x, m):
    return (x + m - 1) // m * m


def _bigram_logits_kernel(idx_ref, table_ref, logits_ref):
    """Inference path: logits = table[idx] for one BT tile (no CE math)."""
    tm, vp = logits_ref.shape
    lane_ids = jax.lax.broadcasted_iota(jnp.int32, (tm, vp), 1)
    one_hot = (lane_ids == idx_ref[...]).astype(jnp.float32)            # (TM, Vp)
    logits_ref[...] = jnp.dot(one_hot, table_ref[...],
                              preferred_element_type=jnp.float32)        # (TM, Vp)


def _bigram_train_kernel(idx_ref, tgt_ref, table_ref, logits_ref, loss_ref,
                         *, bt_total, tile_rows):
    """Embedding lookup + per-row cross-entropy contributions for one BT tile."""
    tile = pl.program_id(0)
    tm, vp = logits_ref.shape
    lane_ids = jax.lax.broadcasted_iota(jnp.int32, (tm, vp), 1)

    # --- Embedding lookup as one-hot matmul (MXU) ---
    one_hot = (lane_ids == idx_ref[...]).astype(jnp.float32)            # (TM, Vp)
    logits = jnp.dot(one_hot, table_ref[...],
                     preferred_element_type=jnp.float32)                 # (TM, Vp)
    logits_ref[...] = logits

    # --- Cross entropy, numerically stable.  Padded vocab lanes hold -1e30:
    #     they never win the max and vanish under exp. ---
    m = jnp.max(logits, axis=-1, keepdims=True)                          # (TM, 1)
    lse = m + jnp.log(jnp.sum(jnp.exp(logits - m), axis=-1, keepdims=True))
    tgt_onehot = (lane_ids == tgt_ref[...]).astype(jnp.float32)          # (TM, Vp)
    tgt_logit = jnp.sum(logits * tgt_onehot, axis=-1, keepdims=True)     # (TM, 1)
    per_row = lse - tgt_logit                                            # (TM, 1)

    # Zero out rows that are BT-axis padding, so tiles stay independent
    # ("parallel" grid axis) and the wrapper can just sum / BT.
    row_ids = tile * tile_rows + jax.lax.broadcasted_iota(jnp.int32, (tm, 1), 0)
    loss_ref[...] = jnp.where(row_ids < bt_total, per_row, 0.0)


def bigram_forward(idx, table, targets=None, *, tile_rows=1024):
    """JAX/Pallas equivalent of BigramModel.forward.

    idx:     (B, T) int32
    table:   (V, V) float32 embedding table
    targets: optional (B, T) int32

    Returns (logits, loss):
      - targets is None:   logits (B, T, V), loss None
      - targets provided:  logits (B*T, V),  loss scalar
    """
    B, T = idx.shape
    V = table.shape[0]
    BT = B * T

    # ---- Lane-dense vocab axis: pad V up to a multiple of 128. ----
    # Real rows get -1e30 in padded columns (logsumexp/max unaffected);
    # padded rows are zero and never selectable (idx/targets < V).
    Vp = _round_up(max(V, 128), 128)
    top = jnp.concatenate(
        [table.astype(jnp.float32),
         jnp.full((V, Vp - V), _NEG_PAD, jnp.float32)], axis=1)          # (V, Vp)
    table_p = jnp.concatenate(
        [top, jnp.zeros((Vp - V, Vp), jnp.float32)], axis=0)             # (Vp, Vp)

    # ---- Tile the BT axis (sublane-aligned, padded rows masked in-kernel). ----
    tm = tile_rows if BT >= tile_rows else _round_up(max(BT, 8), 8)
    bt_pad = _round_up(BT, tm)
    num_tiles = bt_pad // tm

    idx_col = jnp.pad(idx.reshape(BT).astype(jnp.int32), (0, bt_pad - BT))[:, None]

    if targets is None:
        # Inference / generate path: logits only, no CE work, no target DMA.
        logits_p = pl.pallas_call(
            _bigram_logits_kernel,
            out_shape=jax.ShapeDtypeStruct((bt_pad, Vp), jnp.float32),
            grid=(num_tiles,),
            in_specs=[
                pl.BlockSpec((tm, 1), lambda i: (i, 0)),
                pl.BlockSpec((Vp, Vp), lambda i: (0, 0)),
            ],
            out_specs=pl.BlockSpec((tm, Vp), lambda i: (i, 0)),
            compiler_params=pltpu.CompilerParams(
                dimension_semantics=("parallel",)),
        )(idx_col, table_p)
        # NOTE: downstream sampling could keep the padded (BT, Vp) logits to
        # avoid this slice; we slice to match the PyTorch module's shape.
        return logits_p[:BT, :V].reshape(B, T, V), None

    tgt_col = jnp.pad(targets.reshape(BT).astype(jnp.int32),
                      (0, bt_pad - BT))[:, None]

    kernel = functools.partial(_bigram_train_kernel, bt_total=BT, tile_rows=tm)
    logits_p, per_row = pl.pallas_call(
        kernel,
        out_shape=(
            jax.ShapeDtypeStruct((bt_pad, Vp), jnp.float32),
            jax.ShapeDtypeStruct((bt_pad, 1), jnp.float32),
        ),
        grid=(num_tiles,),
        in_specs=[
            pl.BlockSpec((tm, 1), lambda i: (i, 0)),
            pl.BlockSpec((tm, 1), lambda i: (i, 0)),
            pl.BlockSpec((Vp, Vp), lambda i: (0, 0)),
        ],
        out_specs=(
            pl.BlockSpec((tm, Vp), lambda i: (i, 0)),
            pl.BlockSpec((tm, 1), lambda i: (i, 0)),
        ),
        compiler_params=pltpu.CompilerParams(
            dimension_semantics=("parallel",)),
    )(idx_col, tgt_col, table_p)

    loss = jnp.sum(per_row) / jnp.float32(BT)
    return logits_p[:BT, :V], loss


def _reference(idx, table, targets):
    B, T = idx.shape
    logits = table[idx.reshape(-1)]                      # (B*T, V)
    lse = jax.scipy.special.logsumexp(logits, axis=-1)   # (B*T,)
    tgt = logits[jnp.arange(B * T), targets.reshape(-1)]
    loss = jnp.mean(lse - tgt)
    return logits, loss


if __name__ == "__main__":
    key = jax.random.PRNGKey(0)
    k_tab, k_idx, k_tgt = jax.random.split(key, 3)

    vocab_size = 65          # char-level vocab (len(char_set) in the reference)
    B, T = 2, 8

    # Deterministic parameter init (nn.Embedding(vocab_size, vocab_size)).
    table = jax.random.normal(k_tab, (vocab_size, vocab_size), jnp.float32)
    idx = jax.random.randint(k_idx, (B, T), 0, vocab_size, jnp.int32)
    targets = jax.random.randint(k_tgt, (B, T), 0, vocab_size, jnp.int32)

    logits, loss = bigram_forward(idx, table, targets)
    logits = jax.block_until_ready(logits)
    loss = jax.block_until_ready(loss)

    ref_logits, ref_loss = _reference(idx, table, targets)
    assert logits.shape == (B * T, vocab_size)
    assert jnp.allclose(logits, ref_logits, atol=1e-5, rtol=1e-5)
    assert jnp.allclose(loss, ref_loss, atol=1e-5, rtol=1e-5)

    # targets=None path (returns (B, T, C) logits, loss=None) — logits-only kernel.
    logits_nt, loss_nt = bigram_forward(idx, table, None)
    jax.block_until_ready(logits_nt)
    assert logits_nt.shape == (B, T, vocab_size)
    assert loss_nt is None
    assert jnp.allclose(logits_nt.reshape(B * T, vocab_size), ref_logits,
                        atol=1e-5, rtol=1e-5)

    # TODO(synk): generate() uses torch.multinomial sampling; the sampling loop
    # is host-side control flow and is not part of the kernel hot path.
    print("KERNEL_OK")
</pallas_src>

<mosaic_0001>
module attributes {stable_mosaic.version = 11 : i64} {
  func.func @_bigram_train_kernel(%arg0: i32, %arg1: memref<16x1xi32, #tpu.memory_space<vmem>>, %arg2: memref<16x1xi32, #tpu.memory_space<vmem>>, %arg3: memref<128x128xf32, #tpu.memory_space<vmem>>, %arg4: memref<16x128xf32, #tpu.memory_space<vmem>>, %arg5: memref<16x1xf32, #tpu.memory_space<vmem>>) attributes {dimension_semantics = [#tpu.dimension_semantics<parallel>], iteration_bounds = array<i64: 1>, scalar_prefetch = 0 : i64, scratch_operands = 0 : i64, tpu.core_type = #tpu.core_type<tc>, window_params = [{transform_indices = @transform_0, window_bounds = array<i64: 16, 1>}, {transform_indices = @transform_1, window_bounds = array<i64: 16, 1>}, {pipeline_mode = #tpu.pipeline_mode<synchronous>, transform_indices = @transform_2, window_bounds = array<i64: 128, 128>}, {transform_indices = @transform_3, window_bounds = array<i64: 16, 128>}, {transform_indices = @transform_4, window_bounds = array<i64: 16, 1>}]} {
    %0 = tpu.iota {dimensions = array<i32: 1>} : vector<16x128xi32>
    %c0 = arith.constant 0 : index
    %c0_0 = arith.constant 0 : index
    %1 = vector.load %arg1[%c0, %c0_0] : memref<16x1xi32, #tpu.memory_space<vmem>>, vector<16x1xi32>
    %2 = vector.broadcast %1 : vector<16x1xi32> to vector<16x128xi32>
    %3 = arith.cmpi eq, %0, %2 : vector<16x128xi32>
    %4 = arith.extui %3 : vector<16x128xi1> to vector<16x128xi32>
    %5 = arith.sitofp %4 : vector<16x128xi32> to vector<16x128xf32>
    %c0_1 = arith.constant 0 : index
    %c0_2 = arith.constant 0 : index
    %6 = vector.load %arg3[%c0_1, %c0_2] : memref<128x128xf32, #tpu.memory_space<vmem>>, vector<128x128xf32>
    %cst = arith.constant dense<0.000000e+00> : vector<16x128xf32>
    %7 = tpu.matmul %5, %6, %cst {dimension_numbers = #tpu.dot_dimension_numbers<[1], [0], [0], [1], [0, 0, 1, 1], [], []>} : vector<16x128xf32>, vector<128x128xf32>, vector<16x128xf32> -> vector<16x128xf32>
    %c0_3 = arith.constant 0 : index
    %c0_4 = arith.constant 0 : index
    %8 = vector.load %arg4[%c0_3, %c0_4] : memref<16x128xf32, #tpu.memory_space<vmem>>, vector<16x128xf32>
    tpu.vector_store %arg4[%c0_3, %c0_4], %7 {strides = array<i32>} : memref<16x128xf32, #tpu.memory_space<vmem>>, vector<16x128xf32>,
    %cst_5 = arith.constant dense<0xFF800000> : vector<16xf32>
    %9 = vector.multi_reduction <maximumf>, %7, %cst_5 [1] : vector<16x128xf32> to vector<16xf32>
    %10 = vector.shape_cast %9 : vector<16xf32> to vector<16x1xf32>
    %11 = vector.broadcast %10 : vector<16x1xf32> to vector<16x128xf32>
    %12 = arith.subf %7, %11 : vector<16x128xf32>
    %13 = math.exp %12 : vector<16x128xf32>
    %cst_6 = arith.constant dense<0.000000e+00> : vector<16xf32>
    %14 = vector.multi_reduction <add>, %13, %cst_6 [1] : vector<16x128xf32> to vector<16xf32>
    %15 = vector.shape_cast %14 : vector<16xf32> to vector<16x1xf32>
    %16 = math.log %15 : vector<16x1xf32>
    %17 = arith.addf %10, %16 : vector<16x1xf32>
    %c0_7 = arith.constant 0 : index
    %c0_8 = arith.constant 0 : index
    %18 = vector.load %arg2[%c0_7, %c0_8] : memref<16x1xi32, #tpu.memory_space<vmem>>, vector<16x1xi32>
    %19 = vector.broadcast %18 : vector<16x1xi32> to vector<16x128xi32>
    %20 = arith.cmpi eq, %0, %19 : vector<16x128xi32>
    %21 = arith.extui %20 : vector<16x128xi1> to vector<16x128xi32>
    %22 = arith.sitofp %21 : vector<16x128xi32> to vector<16x128xf32>
    %23 = arith.mulf %7, %22 : vector<16x128xf32>
    %cst_9 = arith.constant dense<0.000000e+00> : vector<16xf32>
    %24 = vector.multi_reduction <add>, %23, %cst_9 [1] : vector<16x128xf32> to vector<16xf32>
    %25 = vector.shape_cast %24 : vector<16xf32> to vector<16x1xf32>
    %26 = arith.subf %17, %25 : vector<16x1xf32>
    %c16_i32 = arith.constant 16 : i32
    %27 = arith.muli %arg0, %c16_i32 : i32
    %28 = tpu.iota {dimensions = array<i32: 0>} : vector<16x1xi32>
    %29 = vector.broadcast %27 : i32 to vector<16x1xi32>
    %30 = arith.addi %29, %28 : vector<16x1xi32>
    %c16_i32_10 = arith.constant 16 : i32
    %31 = vector.broadcast %c16_i32_10 : i32 to vector<16x1xi32>
    %32 = arith.cmpi slt, %30, %31 : vector<16x1xi32>
    %cst_11 = arith.constant 0.000000e+00 : f32
    %33 = vector.broadcast %cst_11 : f32 to vector<16x1xf32>
    %34 = arith.select %32, %26, %33 : vector<16x1xi1>, vector<16x1xf32>
    %c0_12 = arith.constant 0 : index
    %c0_13 = arith.constant 0 : index
    %35 = vector.load %arg5[%c0_12, %c0_13] : memref<16x1xf32, #tpu.memory_space<vmem>>, vector<16x1xf32>
    tpu.vector_store %arg5[%c0_12, %c0_13], %34 {strides = array<i32>} : memref<16x1xf32, #tpu.memory_space<vmem>>, vector<16x1xf32>,
    return
  }
  func.func @transform_0(%arg0: i32) -> (i32, i32) {
    %c0_i32 = arith.constant 0 : i32
    %c0_i32_0 = arith.constant 0 : i32
    return %arg0, %c0_i32 : i32, i32
  }
  func.func @transform_1(%arg0: i32) -> (i32, i32) {
    %c0_i32 = arith.constant 0 : i32
    %c0_i32_0 = arith.constant 0 : i32
    return %arg0, %c0_i32 : i32, i32
  }
  func.func @transform_2(%arg0: i32) -> (i32, i32) {
    %c0_i32 = arith.constant 0 : i32
    %c0_i32_0 = arith.constant 0 : i32
    %c0_i32_1 = arith.constant 0 : i32
    return %c0_i32, %c0_i32_0 : i32, i32
  }
  func.func @transform_3(%arg0: i32) -> (i32, i32) {
    %c0_i32 = arith.constant 0 : i32
    %c0_i32_0 = arith.constant 0 : i32
    return %arg0, %c0_i32 : i32, i32
  }
  func.func @transform_4(%arg0: i32) -> (i32, i32) {
    %c0_i32 = arith.constant 0 : i32
    %c0_i32_0 = arith.constant 0 : i32
    return %arg0, %c0_i32 : i32, i32
  }
}

</mosaic_0001>

<bundles_post_ra>
// kernel: tpu_custom_call.1
= control target key start
LH: loop header
LB: loop body
LE: loop exit
PB: predicated region body
PF: predicated region fallthrough
CT: control target
= control target key end

     0   :  { %10 = vsyncpa [#allocation3], 0  ;;  %s322_s0 = inlined_call_operand.vmem [shape: s32[16,1], index: 0, kind: input, shape index: {}]   ;;  %s323_s1 = inlined_call_operand.vmem [shape: s32[16,1], index: 1, kind: input, shape index: {}]   ;;  %s324_s2 = inlined_call_operand.hbm [shape: f32[128,128], index: 2, kind: input, shape index: {}]   ;;  %s325_s3 = inlined_call_operand.hbm [shape: f32[16,128], index: 3, kind: output, shape index: {0}]   ;;  %s326_s4 = inlined_call_operand.vmem [shape: f32[16,1], index: 4, kind: output, shape index: {1}]  }
   0x1   :  { %11 = vsyncpa [#allocation4], 0  ;;  %s20_s17 = sshll.u32 %s324_s2, 4  ;;  %s260_s18 = smov [#allocation2]   ;;  %s21_s17 = int_to_ptr.hbm [resolvable:$true] %s20_s17 }
   0x2   :  { %s22_s19 = sshll.u32 %s260_s18, 4  ;;  %s261_s20 = smov 128   ;;  %s23_s19 = int_to_ptr.vmem [resolvable:$true] %s22_s19 }
   0x3   :  { %s262_s21 = smov 8  }
   0x4   :  { %28 = dma.hbm_to_vmem [thread:$0]  %s21_s17, 2048, %s23_s19, [#allocation3], %s261_s20, %s261_s20, %s262_s21  }
   0x5   :  { %256 = dma.done.wait [#allocation3], 2048  }
   0x6   :  { %257 = vsyncadd [#allocation3], 4294965248  ;;  %v263_v0 = vmov 0   ;;  %v35_v1 = vld [vmem:[%s322_s0] sm:$0xff]  ;;  %v64_v2 = vld [vmem:[#allocation2 + $0x78] sm:$0xff]  ;;  %v33_v21 = vlaneseq  ;;  %v264_v24 = vmov 1.0  }
   0x7   :  { %198 = vset.pattern.permute.xlu0 %v263_v0  ;;  %199 = vset.pattern.permute.xlu2 %v263_v0  ;;  %v63_v3 = vld [vmem:[#allocation2 + $0x70] sm:$0xff]  ;;  %v62_v4 = vld [vmem:[#allocation2 + $0x68] sm:$0xff]  ;;  %v61_v5 = vld [vmem:[#allocation2 + $0x60] sm:$0xff]  ;;  %v265_v27 = vmov 0.0   ;;  %s152_s5 = sshll.u32 %s325_s3, 4  ;;  %vm143_vm4 = vcmask 7168   ;;  %s153_s5 = int_to_ptr.hbm [resolvable:$true] %s152_s5 }
   0x8   :  { %38 = vperm.xlu0 %198, %v35_v1   ;;  %65 = vmatpush.msra.mxu0 %v64_v2  ;;  %v36_v6 = vld [vmem:[%s322_s0 + $0x8] sm:$0xff]  ;;  %v60_v7 = vld [vmem:[#allocation2 + $0x58] sm:$0xff]  ;;  %v59_v8 = vld [vmem:[#allocation2 + $0x50] sm:$0xff]  ;;  %v34_v22 = vand.u32 127, %v33_v21 }
   0x9   :  { %175 = vmatpush.msra.mxu1 %v64_v2  ;;  %v58_v9 = vld [vmem:[#allocation2 + $0x48] sm:$0xff]  ;;  %v57_v10 = vld [vmem:[#allocation2 + $0x40] sm:$0xff]  ;;  %v56_v11 = vld [vmem:[#allocation2 + $0x38] sm:$0xff] }
   0xa   :  { %66 = vmatpush.msra.mxu0 %v63_v3  ;;  %v55_v12 = vld [vmem:[#allocation2 + $0x30] sm:$0xff]  ;;  %v54_v13 = vld [vmem:[#allocation2 + $0x28] sm:$0xff]  ;;  %v53_v14 = vld [vmem:[#allocation2 + $0x20] sm:$0xff] }
   0xb   :  { %176 = vmatpush.msra.mxu1 %v63_v3  ;;  %v52_v15 = vld [vmem:[#allocation2 + $0x18] sm:$0xff]  ;;  %v51_v16 = vld [vmem:[#allocation2 + $0x10] sm:$0xff]  ;;  %v50_v17 = vld [vmem:[#allocation2 + $0x8] sm:$0xff] }
   0xc   :  { %67 = vmatpush.msra.mxu0 %v62_v4  ;;  %v49_v18 = vld [vmem:[#allocation2] sm:$0xff]  ;;  %v111_v20 = vld [vmem:[%s323_s1 + $0x8] sm:$0xff] }
   0xd   :  { %177 = vmatpush.msra.mxu1 %v62_v4  ;;  %v110_v19 = vld [vmem:[%s323_s1] sm:$0xff]  ;;  %s266_s1 = smov [#allocation5]  }
   0xe   :  { %68 = vmatpush.msra.mxu0 %v61_v5  ;;  %113 = vperm.xlu2 %199, %v110_v19   ;;  %s150_s28 = sshll.u32 %s266_s1, 4  ;;  %s151_s28 = int_to_ptr.vmem [resolvable:$true] %s150_s28 }
   0xf   :  { %178 = vmatpush.msra.mxu1 %v61_v5 }
  0x10   :  { %41 = vperm.xlu0 %198, %v36_v6   ;;  %69 = vmatpush.msra.mxu0 %v60_v7 }
  0x11   :  { %179 = vmatpush.msra.mxu1 %v60_v7 }
  0x12   :  { %70 = vmatpush.msra.mxu0 %v59_v8 }
  0x13   :  { %180 = vmatpush.msra.mxu1 %v59_v8 }
  0x14   :  { %71 = vmatpush.msra.mxu0 %v58_v9 }
  0x15   :  { %181 = vmatpush.msra.mxu1 %v58_v9 }
  0x16   :  { %72 = vmatpush.msra.mxu0 %v57_v10  ;;  %116 = vperm.xlu2 %199, %v111_v20  }
  0x17   :  { %182 = vmatpush.msra.mxu1 %v57_v10 }
  0x18   :  { %73 = vmatpush.msra.mxu0 %v56_v11 }
  0x19   :  { %183 = vmatpush.msra.mxu1 %v56_v11 }
  0x1a   :  { %74 = vmatpush.msra.mxu0 %v55_v12 }
  0x1b   :  { %184 = vmatpush.msra.mxu1 %v55_v12 }
  0x1c   :  { %75 = vmatpush.msra.mxu0 %v54_v13 }
  0x1d   :  { %185 = vmatpush.msra.mxu1 %v54_v13 }
  0x1e   :  { %76 = vmatpush.msra.mxu0 %v53_v14 }
  0x1f   :  { %186 = vmatpush.msra.mxu1 %v53_v14 }
  0x20   :  { %77 = vmatpush.msra.mxu0 %v52_v15 }
  0x21   :  { %187 = vmatpush.msra.mxu1 %v52_v15 }
  0x22   :  { %78 = vmatpush.msra.mxu0 %v51_v16 }
  0x23   :  { %188 = vmatpush.msra.mxu1 %v51_v16 }
  0x24   :  { %79 = vmatpush.msra.mxu0 %v50_v17 }
  0x25   :  { %189 = vmatpush.msra.mxu1 %v50_v17 }
  0x26   :  { %80 = vmatpush.msra.mxu0 %v49_v18 }
  0x27   :  { %190 = vmatpush.msra.mxu1 %v49_v18 }
  0x68   :  { %v114_v26 = vpop.permute.xlu2 %113 }
  0x69   :  { %vm118_vm2 = vcmp.eq.s32.totalorder %v34_v22, %v114_v26 }
  0x6a   :  { %v173_v28 = vsel %vm118_vm2, 1.0, %v265_v27 }
  0x70   :  { %v117_v39 = vpop.permute.xlu2 %116 }
  0x71   :  { %vm119_vm3 = vcmp.eq.s32.totalorder %v34_v22, %v117_v39 }
  0x72   :  { %v174_v41 = vsel %vm119_vm3, 1.0, %v265_v27 }
  0x7a   :  { %v39_v23 = vpop.permute.xlu0 %38 }
  0x7b   :  { %vm43_vm0 = vcmp.eq.s32.totalorder %v34_v22, %v39_v23 }
  0x7c   :  { %171 = vmatmul.msk.f32.vlgmr.msra.gmra.mxu0 %vm43_vm0, %v264_v24 }
  0x82   :  { %v42_v25 = vpop.permute.xlu0 %41 }
  0x83   :  { %vm44_vm1 = vcmp.eq.s32.totalorder %v34_v22, %v42_v25 }
  0x84   :  { %172 = vmatmul.msk.f32.vlgmr.msra.gmra.mxu1 %vm44_vm1, %v264_v24 }
  0xf9   :  { %v82_v29 = vpop.f32.mrf.mxu0 }
  0xfa   :  { %88 = vst [vmem:[#allocation5] sm:$0xff] %v82_v29  ;;  %90 = vmax.xlane.f32.xlu1 %v82_v29  ;;  %v124_v30 = vmul.f32 %v173_v28, %v82_v29 }
  0xfc   :  { %126 = vadd.xlane.f32.xlu2 %v124_v30 }
 0x101   :  { %v85_v31 = vpop.f32.mrf.mxu1 }
 0x102   :  { %89 = vst [vmem:[#allocation5 + $0x8] sm:$0xff] %v85_v31  ;;  %92 = vmax.xlane.f32.xlu1 %v85_v31  ;;  %v125_v42 = vmul.f32 %v174_v41, %v85_v31 }
 0x103   :  { %158 = dma.vmem_to_hbm [thread:$0]  %s151_s28, 256, %s153_s5, [#allocation4], %s261_s20, %s261_s20, %s262_s21  }
 0x16d   :  { %v91_v32 = vpop.xlane.xlu1 %90 }
 0x16e   :  { %v94_v33 = vsub.f32 %v82_v29, %v91_v32 }
 0x16f   :  { %v127_v48 = vpop.xlane.xlu2 %126 }
 0x170   :  { %v96_v34 = vmul.f32 1.442695, %v94_v33 }
 0x172   :  { %200 = vpow2.f32 %v96_v34 }
 0x175   :  { %v93_v35 = vpop.xlane.xlu1 %92 }
 0x176   :  { %v95_v36 = vsub.f32 %v85_v31, %v93_v35 }
 0x178   :  { %v201_v37 = vpop.eup %200  ;;  %v98_v38 = vmul.f32 1.442695, %v95_v36 }
 0x179   :  { %100 = vadd.xlane.f32.xlu0 %v201_v37 }
 0x17a   :  { %202 = vpow2.f32 %v98_v38 }
 0x180   :  { %v203_v40 = vpop.eup %202 }
 0x181   :  { %102 = vadd.xlane.f32.xlu1 %v203_v40 }
 0x189   :  { %128 = vadd.xlane.f32.xlu1 %v125_v42 }
 0x1ec   :  { %v101_v43 = vpop.xlane.xlu0 %100 }
 0x1ed   :  { %204 = vlog2.f32 %v101_v43 }
 0x1f3   :  { %v205_v44 = vpop.eup %204 }
 0x1f4   :  { %v105_v45 = vmul.f32 0.6931472, %v205_v44  ;;  %v103_v46 = vpop.xlane.xlu1 %102 }
 0x1f5   :  { %206 = vlog2.f32 %v103_v46 }
 0x1f6   :  { %v108_v47 = vadd.f32 %v105_v45, %v91_v32 }
 0x1f8   :  { %v130_v49 = vsub.f32 %v108_v47, %v127_v48 }
 0x1fa   :  { %144 = vst.msk [vmem:[%s326_s4] sm:$0xff] %vm143_vm4, %v130_v49 }
 0x1fb   :  { %v207_v50 = vpop.eup %206 }
 0x1fc   :  { %v107_v51 = vmul.f32 0.6931472, %v207_v50  ;;  %v129_v53 = vpop.xlane.xlu1 %128 }
 0x1fe   :  { %v109_v52 = vadd.f32 %v107_v51, %v93_v35 }
 0x200   :  { %v131_v54 = vsub.f32 %v109_v52, %v129_v53 }
 0x202   :  { %145 = vst.msk [vmem:[%s326_s4 + $0x8] sm:$0xff] %vm143_vm4, %v131_v54 }
 0x203   :  { %258 = dma.done.wait [#allocation4], 256  }
 0x204   :  { %259 = vsyncadd [#allocation4], 4294967040 }
 0x205   :  { %167 = vsyncpa [#allocation3], 1 }
 0x206   :  { %168 = vsyncpa [#allocation4], 1 }

</bundles_post_ra>
